<compile_context>
chip_gen: v7x
topology: tpu7x:2x2x1
jax: 0.10.0
libtpu: 0.0.40
codegen_flags: <defaults>
</compile_context>

<pallas_src>
import functools

import jax
import jax.numpy as jnp
from jax.experimental import pallas as pl
from jax.experimental.pallas import tpu as pltpu

LANE = 128           # TPU lane width; FC output padded to this for a dense store
BATCH_TILE = 128     # per-grid-step batch tile when the parallel batch grid is used
GRID_MIN_TILES = 2   # use the batch grid only when there are >= 2 full tiles


# ----------------------------------------------------------------------------
# Fused kernel: all LSTM layers (seq_len == 1, zero init state) + final Linear
# ----------------------------------------------------------------------------
def make_fused_lstm_fc_kernel(num_layers, hidden_size):
    H = hidden_size

    def kernel(*refs):
        # refs = (x, [w_ih_t, b] * num_layers, w_fc_t_pad, b_fc_pad, out)
        x_ref = refs[0]
        out_ref = refs[-1]

        h = x_ref[...]                                   # (TB, in_features) f32
        for l in range(num_layers):                      # unrolled; L is tiny
            w = refs[1 + 2 * l][...]                     # (in_f, 4H)  bf16
            b = refs[2 + 2 * l][...]                     # (1, 4H)     f32
            # seq_len==1 and h0==c0==0  =>  no W_hh matmul, no f*c_prev term.
            gates = jnp.dot(h.astype(w.dtype), w,
                            preferred_element_type=jnp.float32) + b  # (TB,4H) f32
            sig = jax.nn.sigmoid(gates)                  # one full-tile EUP pass
            th = jnp.tanh(gates)                         # one full-tile EUP pass
            # Gate order [i, f, g, o].  XLU rolls align tanh(g) under
            # sigmoid(i), then sigmoid(o) under the product, keeping the
            # multiplies full-vreg; only the final h is sliced (offset 0).
            c_full = sig * pltpu.roll(th, shift=2 * H, axis=1)   # lanes [0,H): i*g
            h_full = pltpu.roll(sig, shift=H, axis=1) * jnp.tanh(c_full)
            h = h_full[:, :H]                            # (TB, H) f32, stays in vregs

        w_fc = refs[1 + 2 * num_layers][...]             # (H, LANE) bf16, zero-padded
        b_fc = refs[2 + 2 * num_layers][...]             # (1, LANE) f32, zero-padded
        out_ref[...] = (
            jnp.dot(h.astype(w_fc.dtype), w_fc, preferred_element_type=jnp.float32)
            + b_fc
        ).astype(out_ref.dtype)                          # lane-dense (TB, LANE) store

    return kernel


# ----------------------------------------------------------------------------
# Wrapper: gridless single block for small batch, parallel batch grid at scale
# ----------------------------------------------------------------------------
@functools.partial(jax.jit, static_argnames=("num_layers", "output_size"))
def lstm_module_forward(x, kparams, *, num_layers, output_size):
    # The PyTorch module always runs the LSTM on x.unsqueeze(1): seq_len == 1
    # with zero (h0, c0).  Guard that assumption at the boundary.
    assert x.ndim == 2, "expected (batch, input_size); module forces seq_len == 1"
    B, in_features = x.shape
    H = kparams["b"][0].shape[1] // 4

    flat_inputs = [x]
    for l in range(num_layers):
        flat_inputs += [kparams["w_ih_t"][l], kparams["b"][l]]
    flat_inputs += [kparams["w_fc_t_pad"], kparams["b_fc_pad"]]

    kernel = make_fused_lstm_fc_kernel(num_layers, H)

    # Advisory cost estimate for XLA scheduling around the custom call.
    flops, in_f = 0, in_features
    for _ in range(num_layers):
        flops += 2 * B * in_f * 4 * H + 8 * B * H
        in_f = H
    flops += 2 * B * H * LANE
    transcendentals = num_layers * B * 12 * H
    bytes_accessed = sum(int(a.size) * a.dtype.itemsize for a in flat_inputs)
    bytes_accessed += B * LANE * x.dtype.itemsize
    cost = pl.CostEstimate(flops=int(flops),
                           transcendentals=int(transcendentals),
                           bytes_accessed=int(bytes_accessed))

    out_shape = jax.ShapeDtypeStruct((B, LANE), x.dtype)

    if B % BATCH_TILE == 0 and B // BATCH_TILE >= GRID_MIN_TILES:
        # Large batch: tile the batch axis; "parallel" shards the grid across
        # both TensorCores on v7x (no-op on v5e/v6e).  Weights use full-array
        # blocks with a constant index_map, so they stay resident in VMEM.
        in_specs = [pl.BlockSpec((BATCH_TILE, in_features), lambda i: (i, 0))]
        in_specs += [pl.BlockSpec(a.shape, lambda i: (0, 0))
                     for a in flat_inputs[1:]]
        out_pad = pl.pallas_call(
            kernel,
            out_shape=out_shape,
            grid=(B // BATCH_TILE,),
            in_specs=in_specs,
            out_specs=pl.BlockSpec((BATCH_TILE, LANE), lambda i: (i, 0)),
            compiler_params=pltpu.CompilerParams(
                dimension_semantics=("parallel",),
                vmem_limit_bytes=32 * 1024 * 1024),
            cost_estimate=cost,
        )(*flat_inputs)
    else:
        # Small batch: whole problem is a few tens of KB -> one block, no grid.
        vmem = pl.BlockSpec(memory_space=pltpu.MemorySpace.VMEM)
        out_pad = pl.pallas_call(
            kernel,
            out_shape=out_shape,
            in_specs=[vmem] * len(flat_inputs),
            out_specs=vmem,
            compiler_params=pltpu.CompilerParams(
                vmem_limit_bytes=32 * 1024 * 1024),
            cost_estimate=cost,
        )(*flat_inputs)

    # out[:, -1, :] of the seq_len==1 LSTM is the last layer's h; FC applied in
    # kernel.  Slice the lane-padded slab back to the module's output width.
    return out_pad[:, :output_size]


# ----------------------------------------------------------------------------
# Parameters: PyTorch-shaped init, then kernel-layout preparation
# ----------------------------------------------------------------------------
def init_torch_params(key, input_size, hidden_size, num_layers, output_size):
    """U(-1/sqrt(H), 1/sqrt(H)) init with exactly nn.LSTM / nn.Linear shapes."""
    k = 1.0 / jnp.sqrt(jnp.float32(hidden_size))
    p = {"w_ih": [], "w_hh": [], "b_ih": [], "b_hh": []}
    for l in range(num_layers):
        in_f = input_size if l == 0 else hidden_size
        key, k1, k2, k3, k4 = jax.random.split(key, 5)
        p["w_ih"].append(jax.random.uniform(k1, (4 * hidden_size, in_f), jnp.float32, -k, k))
        p["w_hh"].append(jax.random.uniform(k2, (4 * hidden_size, hidden_size), jnp.float32, -k, k))
        p["b_ih"].append(jax.random.uniform(k3, (4 * hidden_size,), jnp.float32, -k, k))
        p["b_hh"].append(jax.random.uniform(k4, (4 * hidden_size,), jnp.float32, -k, k))
    key, k5, k6 = jax.random.split(key, 3)
    p["w_fc"] = jax.random.uniform(k5, (output_size, hidden_size), jnp.float32, -k, k)
    p["b_fc"] = jax.random.uniform(k6, (output_size,), jnp.float32, -k, k)
    return p


def prepare_kernel_params(tp, weights_dtype=jnp.bfloat16):
    """Kernel layout: transposed / bias-combined / FC lane-padded weights.

    W_hh is dropped: with seq_len == 1 and h0 == 0 it only ever multiplies
    zeros, so it cannot affect the forward pass.  Matmul operands are stored
    in bf16 (f32 accumulation in-kernel); biases stay f32 because they are
    added to the f32 accumulator.
    """
    num_layers = len(tp["w_ih"])
    H = tp["w_hh"][0].shape[1]
    out_size = tp["w_fc"].shape[0]
    kp = {"w_ih_t": [], "b": []}
    for l in range(num_layers):
        kp["w_ih_t"].append(tp["w_ih"][l].T.astype(weights_dtype))          # (in_f, 4H)
        kp["b"].append((tp["b_ih"][l] + tp["b_hh"][l])[None, :].astype(jnp.float32))
    kp["w_fc_t_pad"] = jnp.zeros((H, LANE), weights_dtype).at[:, :out_size].set(
        tp["w_fc"].T.astype(weights_dtype))                                 # (H, LANE)
    kp["b_fc_pad"] = jnp.zeros((1, LANE), jnp.float32).at[:, :out_size].set(
        tp["b_fc"][None, :])                                                # (1, LANE)
    return kp


# ----------------------------------------------------------------------------
# Pure-JAX reference: FULL PyTorch LSTM math (W_hh, forget gate, zero states),
# with the same bf16 matmul-operand precision as the kernel.
# ----------------------------------------------------------------------------
def reference_forward(x, tp, num_layers, hidden_size, weights_dtype=jnp.bfloat16):
    H = hidden_size
    B = x.shape[0]

    def mm(a, w_t):  # bf16 operands, f32 accumulate (mirrors the kernel's dots)
        return jnp.dot(a.astype(weights_dtype), w_t.astype(weights_dtype),
                       preferred_element_type=jnp.float32)

    layer_in = x
    for l in range(num_layers):
        h_prev = jnp.zeros((B, H), jnp.float32)      # h0 == 0
        c_prev = jnp.zeros((B, H), jnp.float32)      # c0 == 0
        gates = (mm(layer_in, tp["w_ih"][l].T) + mm(h_prev, tp["w_hh"][l].T)
                 + tp["b_ih"][l][None, :] + tp["b_hh"][l][None, :])
        i = jax.nn.sigmoid(gates[:, 0 * H:1 * H])
        f = jax.nn.sigmoid(gates[:, 1 * H:2 * H])
        g = jnp.tanh(gates[:, 2 * H:3 * H])
        o = jax.nn.sigmoid(gates[:, 3 * H:4 * H])
        c = f * c_prev + i * g
        layer_in = o * jnp.tanh(c)
    return mm(layer_in, tp["w_fc"].T) + tp["b_fc"][None, :]


if __name__ == "__main__":
    input_size, hidden_size, num_layers, output_size = 16, 32, 2, 8

    key = jax.random.PRNGKey(0)
    key, pkey = jax.random.split(key)
    torch_params = init_torch_params(pkey, input_size, hidden_size, num_layers, output_size)
    kparams = prepare_kernel_params(torch_params)

    # 1) Small batch -> single-block gridless launch (the module's original usage).
    key, xkey = jax.random.split(key)
    x_small = jax.random.normal(xkey, (8, input_size), jnp.float32)
    out_small = jax.block_until_ready(
        lstm_module_forward(x_small, kparams,
                            num_layers=num_layers, output_size=output_size))
    ref_small = reference_forward(x_small, torch_params, num_layers, hidden_size)
    assert out_small.shape == (8, output_size), out_small.shape
    assert jnp.allclose(out_small, ref_small, atol=5e-3, rtol=5e-3), "small-batch mismatch"

    # 2) Larger batch -> parallel batch grid (fills the MXU M dimension and
    #    shards across both TensorCores on v7x).
    key, xkey2 = jax.random.split(key)
    x_big = jax.random.normal(xkey2, (256, input_size), jnp.float32)
    out_big = jax.block_until_ready(
        lstm_module_forward(x_big, kparams,
                            num_layers=num_layers, output_size=output_size))
    ref_big = reference_forward(x_big, torch_params, num_layers, hidden_size)
    assert out_big.shape == (256, output_size), out_big.shape
    assert jnp.allclose(out_big, ref_big, atol=5e-3, rtol=5e-3), "large-batch mismatch"

    print("KERNEL_OK")
</pallas_src>

<mosaic_0001>
module attributes {stable_mosaic.version = 11 : i64} {
  func.func @kernel(%arg0: memref<8x16xf32, #tpu.memory_space<vmem>>, %arg1: memref<16x128xbf16, #tpu.memory_space<vmem>>, %arg2: memref<1x128xf32, #tpu.memory_space<vmem>>, %arg3: memref<32x128xbf16, #tpu.memory_space<vmem>>, %arg4: memref<1x128xf32, #tpu.memory_space<vmem>>, %arg5: memref<32x128xbf16, #tpu.memory_space<vmem>>, %arg6: memref<1x128xf32, #tpu.memory_space<vmem>>, %arg7: memref<8x128xf32, #tpu.memory_space<vmem>>) attributes {dimension_semantics = [], scalar_prefetch = 0 : i64, scratch_operands = 0 : i64, tpu.core_type = #tpu.core_type<tc>} {
    %c0 = arith.constant 0 : index
    %c0_0 = arith.constant 0 : index
    %0 = vector.load %arg0[%c0, %c0_0] : memref<8x16xf32, #tpu.memory_space<vmem>>, vector<8x16xf32>
    %c0_1 = arith.constant 0 : index
    %c0_2 = arith.constant 0 : index
    %1 = vector.load %arg1[%c0_1, %c0_2] : memref<16x128xbf16, #tpu.memory_space<vmem>>, vector<16x128xbf16>
    %c0_3 = arith.constant 0 : index
    %c0_4 = arith.constant 0 : index
    %2 = vector.load %arg2[%c0_3, %c0_4] : memref<1x128xf32, #tpu.memory_space<vmem>>, vector<1x128xf32>
    %3 = arith.truncf %0 : vector<8x16xf32> to vector<8x16xbf16>
    %cst = arith.constant dense<0.000000e+00> : vector<8x128xf32>
    %4 = tpu.matmul %3, %1, %cst {dimension_numbers = #tpu.dot_dimension_numbers<[1], [0], [0], [1], [0, 0, 1, 1], [], []>} : vector<8x16xbf16>, vector<16x128xbf16>, vector<8x128xf32> -> vector<8x128xf32>
    %5 = vector.broadcast %2 : vector<1x128xf32> to vector<8x128xf32>
    %6 = arith.addf %4, %5 : vector<8x128xf32>
    %7 = arith.negf %6 : vector<8x128xf32>
    %8 = math.exp %7 : vector<8x128xf32>
    %cst_5 = arith.constant 1.000000e+00 : f32
    %9 = vector.broadcast %cst_5 : f32 to vector<8x128xf32>
    %10 = arith.addf %9, %8 : vector<8x128xf32>
    %11 = arith.divf %9, %10 : vector<8x128xf32>
    %12 = math.tanh %6 : vector<8x128xf32>
    %c64_i32 = arith.constant 64 : i32
    %13 = tpu.dynamic_rotate %12 by %c64_i32 dim 1 : vector<8x128xf32>, i32 -> vector<8x128xf32>
    %14 = arith.mulf %11, %13 : vector<8x128xf32>
    %c32_i32 = arith.constant 32 : i32
    %15 = tpu.dynamic_rotate %11 by %c32_i32 dim 1 : vector<8x128xf32>, i32 -> vector<8x128xf32>
    %16 = math.tanh %14 : vector<8x128xf32>
    %17 = arith.mulf %15, %16 : vector<8x128xf32>
    %18 = vector.extract_strided_slice %17 {offsets = [0, 0], sizes = [8, 32], strides = [1, 1]} : vector<8x128xf32> to vector<8x32xf32>
    %c0_6 = arith.constant 0 : index
    %c0_7 = arith.constant 0 : index
    %19 = vector.load %arg3[%c0_6, %c0_7] : memref<32x128xbf16, #tpu.memory_space<vmem>>, vector<32x128xbf16>
    %c0_8 = arith.constant 0 : index
    %c0_9 = arith.constant 0 : index
    %20 = vector.load %arg4[%c0_8, %c0_9] : memref<1x128xf32, #tpu.memory_space<vmem>>, vector<1x128xf32>
    %21 = arith.truncf %18 : vector<8x32xf32> to vector<8x32xbf16>
    %cst_10 = arith.constant dense<0.000000e+00> : vector<8x128xf32>
    %22 = tpu.matmul %21, %19, %cst_10 {dimension_numbers = #tpu.dot_dimension_numbers<[1], [0], [0], [1], [0, 0, 1, 1], [], []>} : vector<8x32xbf16>, vector<32x128xbf16>, vector<8x128xf32> -> vector<8x128xf32>
    %23 = vector.broadcast %20 : vector<1x128xf32> to vector<8x128xf32>
    %24 = arith.addf %22, %23 : vector<8x128xf32>
    %25 = arith.negf %24 : vector<8x128xf32>
    %26 = math.exp %25 : vector<8x128xf32>
    %cst_11 = arith.constant 1.000000e+00 : f32
    %27 = vector.broadcast %cst_11 : f32 to vector<8x128xf32>
    %28 = arith.addf %27, %26 : vector<8x128xf32>
    %29 = arith.divf %27, %28 : vector<8x128xf32>
    %30 = math.tanh %24 : vector<8x128xf32>
    %c64_i32_12 = arith.constant 64 : i32
    %31 = tpu.dynamic_rotate %30 by %c64_i32_12 dim 1 : vector<8x128xf32>, i32 -> vector<8x128xf32>
    %32 = arith.mulf %29, %31 : vector<8x128xf32>
    %c32_i32_13 = arith.constant 32 : i32
    %33 = tpu.dynamic_rotate %29 by %c32_i32_13 dim 1 : vector<8x128xf32>, i32 -> vector<8x128xf32>
    %34 = math.tanh %32 : vector<8x128xf32>
    %35 = arith.mulf %33, %34 : vector<8x128xf32>
    %36 = vector.extract_strided_slice %35 {offsets = [0, 0], sizes = [8, 32], strides = [1, 1]} : vector<8x128xf32> to vector<8x32xf32>
    %c0_14 = arith.constant 0 : index
    %c0_15 = arith.constant 0 : index
    %37 = vector.load %arg5[%c0_14, %c0_15] : memref<32x128xbf16, #tpu.memory_space<vmem>>, vector<32x128xbf16>
    %c0_16 = arith.constant 0 : index
    %c0_17 = arith.constant 0 : index
    %38 = vector.load %arg6[%c0_16, %c0_17] : memref<1x128xf32, #tpu.memory_space<vmem>>, vector<1x128xf32>
    %39 = arith.truncf %36 : vector<8x32xf32> to vector<8x32xbf16>
    %cst_18 = arith.constant dense<0.000000e+00> : vector<8x128xf32>
    %40 = tpu.matmul %39, %37, %cst_18 {dimension_numbers = #tpu.dot_dimension_numbers<[1], [0], [0], [1], [0, 0, 1, 1], [], []>} : vector<8x32xbf16>, vector<32x128xbf16>, vector<8x128xf32> -> vector<8x128xf32>
    %41 = vector.broadcast %38 : vector<1x128xf32> to vector<8x128xf32>
    %42 = arith.addf %40, %41 : vector<8x128xf32>
    %c0_19 = arith.constant 0 : index
    %c0_20 = arith.constant 0 : index
    %43 = vector.load %arg7[%c0_19, %c0_20] : memref<8x128xf32, #tpu.memory_space<vmem>>, vector<8x128xf32>
    tpu.vector_store %arg7[%c0_19, %c0_20], %42 {strides = array<i32>} : memref<8x128xf32, #tpu.memory_space<vmem>>, vector<8x128xf32>,
    return
  }
}

</mosaic_0001>

<bundles_post_ra>
// kernel: lstm_module_forward.1
= control target key start
LH: loop header
LB: loop body
LE: loop exit
PB: predicated region body
PF: predicated region fallthrough
CT: control target
= control target key end

     0   :  { %12 = vsyncpa [#allocation3], 0  ;;  %s599_s0 = inlined_call_operand.hbm [shape: f32[8,16], index: 0, kind: input, shape index: {}]   ;;  %s600_s1 = inlined_call_operand.hbm [shape: bf16[16,128], index: 1, kind: input, shape index: {}]   ;;  %s601_s2 = inlined_call_operand.vmem [shape: f32[1,128], index: 2, kind: input, shape index: {}]   ;;  %s602_s3 = inlined_call_operand.vmem [shape: bf16[32,128], index: 3, kind: input, shape index: {}]   ;;  %s603_s4 = inlined_call_operand.vmem [shape: f32[1,128], index: 4, kind: input, shape index: {}]   ;;  %s604_s5 = inlined_call_operand.hbm [shape: bf16[32,128], index: 5, kind: input, shape index: {}]   ;;  %s605_s6 = inlined_call_operand.vmem [shape: f32[1,128], index: 6, kind: input, shape index: {}]   ;;  %s606_s7 = inlined_call_operand.hbm [shape: f32[8,128], index: 7, kind: output, shape index: {}]  }
   0x1   :  { %13 = vsyncpa [#allocation6], 0 }
   0x2   :  { %14 = vsyncpa [#allocation4], 0  ;;  %s475_s24 = smov [#allocation5]   ;;  %s381_s28 = scalar_lea.hbm %s600_s1, 128 }
   0x3   :  { %s30_s25 = sshll.u32 %s475_s24, 4  ;;  %p382_p0 = scmp.ne.s32.totalorder %s600_s1, %s381_s28  ;;  %s31_s25 = int_to_ptr.vmem [resolvable:$true] %s30_s25 }
   0x4   :  { %p385_p1 = scmp.lt.u32.totalorder %s381_s28, %s600_s1 }
   0x6   :  { %p387_p2 = pnand %p385_p1, %p382_p0 }
   0x8   :  { %390 = shalt.err (!%p387_p2)
}
   0x9   :  { %s391_s10 = scalar_lea.vmem %s31_s25, 128  ;;  %p396_p4 = scmp.lt.s32.totalorder %s31_s25, %s31_s25 }
   0xa   :  { %p392_p3 = scmp.ne.s32.totalorder %s31_s25, %s391_s10  ;;  %p397_p5 = scmp.lt.s32.totalorder %s391_s10, %s391_s10 }
   0xc   :  { %p398_p6 = por %p397_p5, %p396_p4 }
   0xe   :  { %p399_p7 = pnand %p398_p6, %p392_p3 }
  0x10   :  { %402 = shalt.err (!%p399_p7)
}
  0x11   :  { %s476_s11 = smov 64   ;;  %s477_s12 = smov 4  }
  0x12   :  { %36 = dma.hbm_to_vmem [thread:$0]  %s600_s1, 128, %s31_s25, [#allocation6], %s476_s11, %s476_s11, %s477_s12  }
  0x13   :  { %s478_s15 = smov [#allocation2]   ;;  %s479_s17 = smov [#allocation7]  }
  0x14   :  { %s21_s16 = sshll.u32 %s478_s15, 4  ;;  %s48_s18 = sshll.u32 %s479_s17, 4  ;;  %s22_s16 = int_to_ptr.vmem [resolvable:$true] %s21_s16  ;;  %s49_s18 = int_to_ptr.vmem [resolvable:$true] %s48_s18 }
  0x15   :  { %s403_s21 = scalar_lea.hbm %s599_s0, 128 }
  0x16   :  { %p404_p8 = scmp.ne.s32.totalorder %s599_s0, %s403_s21  ;;  %p407_p9 = scmp.lt.u32.totalorder %s403_s21, %s599_s0 }
  0x18   :  { %p409_p10 = pnand %p407_p9, %p404_p8 }
  0x1a   :  { %412 = shalt.err (!%p409_p10)
}
  0x1b   :  { %s413_s1 = scalar_lea.vmem %s22_s16, 128  ;;  %p418_p12 = scmp.lt.s32.totalorder %s22_s16, %s22_s16 }
  0x1c   :  { %p414_p11 = scmp.ne.s32.totalorder %s22_s16, %s413_s1  ;;  %p419_p13 = scmp.lt.s32.totalorder %s413_s1, %s413_s1 }
  0x1e   :  { %p420_p0 = por %p419_p13, %p418_p12 }
  0x20   :  { %p421_p1 = pnand %p420_p0, %p414_p11 }
  0x22   :  { %424 = shalt.err (!%p421_p1)
}
  0x23   :  { %24 = dma.hbm_to_vmem [thread:$0]  %s599_s0, 128, %s22_s16, [#allocation3]  }
  0x24   :  { %s425_s30 = scalar_lea.hbm %s604_s5, 256 }
  0x25   :  { %p426_p2 = scmp.ne.s32.totalorder %s604_s5, %s425_s30  ;;  %p429_p3 = scmp.lt.u32.totalorder %s425_s30, %s604_s5 }
  0x27   :  { %p431_p4 = pnand %p429_p3, %p426_p2 }
  0x29   :  { %434 = shalt.err (!%p431_p4)
}
  0x2a   :  { %s435_s14 = scalar_lea.vmem %s49_s18, 256  ;;  %p440_p6 = scmp.lt.s32.totalorder %s49_s18, %s49_s18 }
  0x2b   :  { %p436_p5 = scmp.ne.s32.totalorder %s49_s18, %s435_s14  ;;  %p441_p7 = scmp.lt.s32.totalorder %s435_s14, %s435_s14 }
  0x2d   :  { %p442_p8 = por %p441_p7, %p440_p6 }
  0x2f   :  { %p443_p9 = pnand %p442_p8, %p436_p5 }
  0x31   :  { %446 = shalt.err (!%p443_p9)
}
  0x32   :  { %54 = dma.hbm_to_vmem [thread:$0]  %s604_s5, 256, %s49_s18, [#allocation6], %s476_s11, %s476_s11, %s477_s12  }
  0x33   :  { %469 = dma.done.wait [#allocation3], 128  }
  0x34   :  { %470 = vsyncadd [#allocation3], 4294967168 }
  0x35   :  { %471 = dma.done.wait [#allocation6], 384  }
  0x36   :  { %472 = vsyncadd [#allocation6], 4294966912  ;;  %v480_v0 = vmov 0.0   ;;  %vm481_vm0 = vmmov 0   ;;  %v360_v1 = vld [vmem:[#allocation5] sm:$0xff]   ;;  %v67_v2 = vld [vmem:[#allocation2] sm:$0xff] }
  0x37   :  { %329 = vmatprep.subr.bf16.mxu0 %v480_v0  ;;  %331 = vmatprep.mubr.msk.bf16.mxu0 %vm481_vm0, %v480_v0  ;;  %vm84_vm1 = vcmask 130048   ;;  %v71_v3 = vpack.c.bf16 %v67_v2, %v67_v2  ;;  %v308_v4 = vld [vmem:[%s601_s2] ss:$0 sm:$0xff]  ;;  %v362_v14 = vld [vmem:[%s602_s3 + $0x8] sm:$0xff]   ;;  %s482_s19 = smov 32   ;;  %vm166_vm2 = vcmask 261120  }
  0x38   :  { %335 = vmatprep.subr.bf16.mxu1 %v480_v0  ;;  %339 = vmatprep.mubr.msk.bf16.mxu1 %vm481_vm0, %v480_v0  ;;  %v361_v11 = vld [vmem:[%s602_s3] sm:$0xff]   ;;  %v364_v33 = vld [vmem:[#allocation7 + $0x8] sm:$0xff]  }
  0x39   :  { %330 = vmatpush3.bf16.msra.mxu0 %v360_v1  ;;  %336 = vmatpush3.bf16.msra.mxu1 %v361_v11  ;;  %v312_v23 = vld [vmem:[%s603_s4] ss:$0 sm:$0xff] }
  0x3a   :  { %343 = vmatprep.subr.bf16.mxu0 %v480_v0  ;;  %337 = vmatprep.subr.bf16.mxu1 %v480_v0  ;;  %v363_v30 = vld [vmem:[#allocation7] sm:$0xff]  }
  0x3b   :  { %v317_v42 = vld [vmem:[%s605_s6] ss:$0 sm:$0xff] }
  0x3c   :  { %332 = vmatmul.mubr.msk.bf16.vlgmr.msra.gmra.mrb[0].mxu0 %vm84_vm1, %v71_v3 }
  0x3d   :  { %347 = vmatprep.mubr.msk.bf16.mxu0 %vm481_vm0, %v480_v0  ;;  %338 = vmatpush3.bf16.msra.mxu1 %v362_v14 }
  0x3e   :  { %344 = vmatpush3.bf16.msra.mxu0 %v363_v30 }
  0x3f   :  { %345 = vmatprep.subr.bf16.mxu0 %v480_v0 }
  0x42   :  { %346 = vmatpush3.bf16.msra.mxu0 %v364_v33 }
 0x10f   :  { %v122_v5 = vpop.f32.mrb[0].mxu0 }
 0x110   :  { %v123_v6 = vadd.f32 %v308_v4, %v122_v5  ;;  %v333_v7 = vpop.f32.mrb[1].mxu0 }
 0x111   :  { %v125_v8 = vpop.f32.mrb[2].mxu0 }
 0x112   :  { %v311_v9 = vmul.f32 -1.442695, %v123_v6  ;;  %v334_v10 = vpop.f32.mrb[3].mxu0  ;;  %365 = vtanh.f32 %v123_v6 }
 0x114   :  { %367 = vpow2.f32 %v311_v9 }
 0x11c   :  { %v366_v12 = vpop.eup %365 }
 0x11d   :  { %135 = vrot.lane.b32.xlu0 %v366_v12, %s476_s11 }
 0x11e   :  { %v368_v13 = vpop.eup %367 }
 0x11f   :  { %v131_v15 = vadd.f32 1.0, %v368_v13 }
 0x121   :  { %369 = vrcp.f32 %v131_v15 }
 0x12b   :  { %v370_v16 = vpop.eup %369 }
 0x12c   :  { %138 = vrot.lane.b32.xlu0 %v370_v16, %s482_s19 }
 0x18f   :  { %v136_v17 = vpop.permute.xlu0 %135 }
 0x190   :  { %v137_v18 = vmul.f32 %v370_v16, %v136_v17 }
 0x192   :  { %371 = vtanh.f32 %v137_v18 }
 0x19c   :  { %v372_v19 = vpop.eup %371 }
 0x19e   :  { %v139_v20 = vpop.permute.xlu0 %138 }
 0x19f   :  { %v141_v21 = vmul.f32 %v372_v19, %v139_v20 }
 0x1a1   :  { %v147_v22 = vpack.c.bf16 %v141_v21, %v141_v21 }
 0x1a3   :  { %340 = vmatmul.mubr.msk.bf16.vlgmr.msra.gmra.mrb[0].mxu1 %vm166_vm2, %v147_v22 }
 0x276   :  { %v204_v24 = vpop.f32.mrb[0].mxu1 }
 0x277   :  { %v205_v25 = vadd.f32 %v312_v23, %v204_v24  ;;  %v341_v26 = vpop.f32.mrb[1].mxu1 }
 0x278   :  { %v207_v27 = vpop.f32.mrb[2].mxu1 }
 0x279   :  { %v316_v28 = vmul.f32 -1.442695, %v205_v25  ;;  %v342_v29 = vpop.f32.mrb[3].mxu1  ;;  %373 = vtanh.f32 %v205_v25 }
 0x27b   :  { %375 = vpow2.f32 %v316_v28 }
 0x283   :  { %v374_v31 = vpop.eup %373 }
 0x284   :  { %217 = vrot.lane.b32.xlu1 %v374_v31, %s476_s11  ;;  %s483_s11 = smov [#allocation8]  }
 0x285   :  { %v376_v32 = vpop.eup %375  ;;  %s298_s22 = sshll.u32 %s483_s11, 4  ;;  %s299_s22 = int_to_ptr.vmem [resolvable:$true] %s298_s22 }
 0x286   :  { %v213_v34 = vadd.f32 1.0, %v376_v32  ;;  %s447_s23 = scalar_lea.vmem %s299_s22, 128  ;;  %p452_p11 = scmp.lt.s32.totalorder %s299_s22, %s299_s22 }
 0x287   :  { %p448_p10 = scmp.ne.s32.totalorder %s299_s22, %s447_s23  ;;  %p453_p12 = scmp.lt.s32.totalorder %s447_s23, %s447_s23 }
 0x288   :  { %377 = vrcp.f32 %v213_v34 }
 0x289   :  { %p454_p13 = por %p453_p12, %p452_p11 }
 0x28b   :  { %p455_p0 = pnand %p454_p13, %p448_p10 }
 0x292   :  { %v378_v35 = vpop.eup %377 }
 0x293   :  { %220 = vrot.lane.b32.xlu1 %v378_v35, %s482_s19 }
 0x2f6   :  { %v218_v36 = vpop.permute.xlu1 %217 }
 0x2f7   :  { %v219_v37 = vmul.f32 %v378_v35, %v218_v36 }
 0x2f9   :  { %379 = vtanh.f32 %v219_v37 }
 0x303   :  { %v380_v38 = vpop.eup %379 }
 0x305   :  { %v221_v39 = vpop.permute.xlu1 %220 }
 0x306   :  { %v223_v40 = vmul.f32 %v380_v38, %v221_v39 }
 0x308   :  { %v229_v41 = vpack.c.bf16 %v223_v40, %v223_v40 }
 0x30a   :  { %348 = vmatmul.mubr.msk.bf16.vlgmr.msra.gmra.mrb[4].mxu0 %vm166_vm2, %v229_v41 }
 0x3dd   :  { %v285_v43 = vpop.f32.mrb[4].mxu0 }
 0x3de   :  { %v286_v44 = vadd.f32 %v317_v42, %v285_v43  ;;  %v349_v45 = vpop.f32.mrb[5].mxu0 }
 0x3df   :  { %v288_v46 = vpop.f32.mrb[6].mxu0 }
 0x3e0   :  { %291 = vst [vmem:[#allocation8] sm:$0xff] %v286_v44  ;;  %v350_v47 = vpop.f32.mrb[7].mxu0 }
 0x3e1   :  { %458 = shalt.err (!%p455_p0)
}
 0x3e2   :  { %s459_s6 = scalar_lea.hbm %s606_s7, 128 }
 0x3e3   :  { %p460_p1 = scmp.ne.s32.totalorder %s606_s7, %s459_s6  ;;  %p463_p2 = scmp.lt.u32.totalorder %s459_s6, %s606_s7 }
 0x3e5   :  { %p465_p3 = pnand %p463_p2, %p460_p1 }
 0x3e7   :  { %468 = shalt.err (!%p465_p3)
}
 0x3e8   :  { %301 = dma.vmem_to_hbm [thread:$0]  %s299_s22, 128, %s606_s7, [#allocation4]  }
 0x3e9   :  { %473 = dma.done.wait [#allocation4], 128  }
 0x3ea   :  { %474 = vsyncadd [#allocation4], 4294967168 }
 0x3eb   :  { %305 = vsyncpa [#allocation3], 1 }
 0x3ec   :  { %306 = vsyncpa [#allocation6], 1 }
 0x3ed   :  { %307 = vsyncpa [#allocation4], 1 }

</bundles_post_ra>
